<compile_context>
chip_gen: v5e
topology: v5e:2x2
jax: 0.10.0
libtpu: 0.0.40
codegen_flags: <defaults>
</compile_context>

<pallas_src>
import functools

import jax
import jax.numpy as jnp
from jax.experimental import pallas as pl
from jax.experimental.pallas import tpu as pltpu

LEAKY_SLOPE = 0.01   # nn.LeakyReLU default negative_slope
LN_EPS = 1e-12       # LayerNorm(d_model, eps=1e-12)


def _round_up(n, m):
    return (n + m - 1) // m * m


def _mlm_decoder_kernel(x_ref, wd_ref, rows_ref, wdec_ref, bdec_ref, out_ref,
                        h_ref, *, d_model, d_pad):
    """Fused: x @ Wd + b -> LeakyReLU -> LayerNorm -> @ Wdec_tile + b_dec_tile."""
    j = pl.program_id(1)  # vocab-tile index (innermost grid axis)

    # Compute the transformed hidden state once per batch tile and cache it.
    @pl.when(j == 0)
    def _compute_hidden():
        # Dense matmul in native dtype, f32 accumulation on the MXU.
        h = jnp.dot(x_ref[...], wd_ref[...], preferred_element_type=jnp.float32)

        rows = rows_ref[...].astype(jnp.float32)     # (3, Dp): bias / gamma / beta
        b = rows[0:1, :]
        g = rows[1:2, :]
        be = rows[2:3, :]

        h = h + b
        # LeakyReLU
        h = jnp.where(h >= 0, h, LEAKY_SLOPE * h)

        # LayerNorm over the true d_model features (padded columns are zero).
        inv_d = 1.0 / float(d_model)
        mean = jnp.sum(h, axis=-1, keepdims=True) * inv_d
        centered = h - mean
        if d_pad != d_model:
            # zero the padded feature columns so they do not pollute the variance
            col = jax.lax.broadcasted_iota(jnp.int32, centered.shape, 1)
            centered = jnp.where(col < d_model, centered, 0.0)
        var = jnp.sum(centered * centered, axis=-1, keepdims=True) * inv_d
        hn = centered * jax.lax.rsqrt(var + LN_EPS)
        hn = hn * g + be          # gamma/beta zero in padded cols -> stays zero
        h_ref[...] = hn.astype(h_ref.dtype)   # cache in decoder-weight dtype

    # Decoder matmul for this vocab tile (f32 accumulation), add decoder bias.
    out = jnp.dot(h_ref[...], wdec_ref[...], preferred_element_type=jnp.float32)
    out = out + bdec_ref[...].astype(jnp.float32)
    out_ref[...] = out.astype(out_ref.dtype)


@functools.partial(jax.jit, static_argnames=("batch_tile", "vocab_tile"))
def mlm_decoder(x, params, *, batch_tile=None, vocab_tile=None):
    """x: [..., d_model] -> mlm scores [..., vocab_size]."""
    orig_shape = x.shape
    d_model = orig_shape[-1]
    x2 = x.reshape(-1, d_model)
    n_rows = x2.shape[0]
    vocab = params["w_dec"].shape[1]

    d_pad = _round_up(d_model, 128)

    xb = x.dtype.itemsize
    wb = params["w_dense"].dtype.itemsize
    db = params["w_dec"].dtype.itemsize
    ob = x.dtype.itemsize  # output keeps the input dtype

    # --- batch tile: multiple of 8; large enough to amortize wdec streaming ---
    if batch_tile is None:
        if n_rows >= 512:
            tb = 512
        elif n_rows >= 256:
            tb = 256
        else:
            tb = _round_up(max(n_rows, 8), 8)
    else:
        tb = batch_tile
    n_pad = _round_up(n_rows, tb)

    # --- vocab tile: largest multiple of 128 keeping working set < ~40 MiB ---
    v128 = _round_up(vocab, 128)
    if vocab_tile is None:
        budget = 40 << 20
        fixed = (2 * tb * d_pad * xb        # x tile (double-buffered)
                 + 2 * d_pad * d_pad * wb   # dense weight (resident)
                 + 2 * 3 * d_pad * wb       # packed bias/gamma/beta
                 + tb * d_pad * db)         # hidden scratch
        per_lane = 2 * d_pad * db + 2 * db + 2 * tb * ob   # wdec + bdec + out cols
        tv = (max(budget - fixed, 0) // per_lane) // 128 * 128
        tv = int(min(v128, max(tv, 128)))
    else:
        tv = vocab_tile
    v_pad = _round_up(vocab, tv)

    grid = (n_pad // tb, v_pad // tv)

    # --- pad inputs / params to lane-dense shapes (layout plumbing only) ---
    x_p = jnp.pad(x2, ((0, n_pad - n_rows), (0, d_pad - d_model)))
    wd_p = jnp.pad(params["w_dense"], ((0, d_pad - d_model), (0, d_pad - d_model)))
    rows_p = jnp.pad(
        jnp.stack([params["b_dense"], params["gamma"], params["beta"]], axis=0),
        ((0, 0), (0, d_pad - d_model)))
    wdec_p = jnp.pad(params["w_dec"], ((0, d_pad - d_model), (0, v_pad - vocab)))
    bdec_p = jnp.pad(params["b_dec"].reshape(1, -1), ((0, 0), (0, v_pad - vocab)))

    # Actual double-buffered footprint (for the scoped-VMEM hint).
    need = (2 * tb * d_pad * xb + 2 * d_pad * d_pad * wb + 2 * 3 * d_pad * wb
            + tb * d_pad * db + 2 * d_pad * tv * db + 2 * tv * db
            + 2 * tb * tv * ob)
    vmem_limit = int(min(max(need + (4 << 20), 16 << 20), 128 << 20))

    kernel = functools.partial(_mlm_decoder_kernel, d_model=d_model, d_pad=d_pad)

    out_p = pl.pallas_call(
        kernel,
        out_shape=jax.ShapeDtypeStruct((n_pad, v_pad), x.dtype),
        grid_spec=pltpu.PrefetchScalarGridSpec(
            num_scalar_prefetch=0,
            grid=grid,
            in_specs=[
                pl.BlockSpec((tb, d_pad), lambda i, j: (i, 0)),      # x tile
                pl.BlockSpec((d_pad, d_pad), lambda i, j: (0, 0)),   # dense weight (resident)
                pl.BlockSpec((3, d_pad), lambda i, j: (0, 0)),       # packed bias/gamma/beta
                pl.BlockSpec((d_pad, tv), lambda i, j: (0, j)),      # decoder weight tile
                pl.BlockSpec((1, tv), lambda i, j: (0, j)),          # decoder bias tile
            ],
            out_specs=pl.BlockSpec((tb, tv), lambda i, j: (i, j)),
            scratch_shapes=[pltpu.VMEM((tb, d_pad), params["w_dec"].dtype)],
        ),
        compiler_params=pltpu.CompilerParams(
            dimension_semantics=("parallel", "arbitrary"),
            vmem_limit_bytes=vmem_limit),
    )(x_p, wd_p, rows_p, wdec_p, bdec_p)

    out = out_p[:n_rows, :vocab]
    return out.reshape(*orig_shape[:-1], vocab)


def init_params(key, d_model, vocab_size, dtype=jnp.float32):
    """Mimics PyTorch init: nn.Linear U[-1/sqrt(fan_in), +], LN gamma=1/beta=0,
    mlmBias = zeros (trainable bias attached to the bias-less decoder)."""
    kw1, kb1, kw2 = jax.random.split(key, 3)
    bound = 1.0 / (d_model ** 0.5)
    w_dense = jax.random.uniform(kw1, (d_model, d_model), dtype, -bound, bound)
    b_dense = jax.random.uniform(kb1, (d_model,), dtype, -bound, bound)
    w_dec = jax.random.uniform(kw2, (d_model, vocab_size), dtype, -bound, bound)
    return dict(
        w_dense=w_dense, b_dense=b_dense,
        gamma=jnp.ones((d_model,), dtype), beta=jnp.zeros((d_model,), dtype),
        w_dec=w_dec, b_dec=jnp.zeros((vocab_size,), dtype),
    )


def reference_forward(x, p):
    """Pure-JAX reference matching the PyTorch MLM_Decoder forward."""
    h = x @ p["w_dense"] + p["b_dense"]
    h = jnp.where(h >= 0, h, LEAKY_SLOPE * h)
    mean = jnp.mean(h, axis=-1, keepdims=True)
    var = jnp.mean((h - mean) ** 2, axis=-1, keepdims=True)
    h = (h - mean) * jax.lax.rsqrt(var + LN_EPS)
    h = h * p["gamma"] + p["beta"]
    return h @ p["w_dec"] + p["b_dec"]


if __name__ == "__main__":
    key = jax.random.PRNGKey(0)
    k_x, k_p = jax.random.split(key)

    batch, seq_len, d_model, vocab_size = 2, 8, 32, 40
    x = jax.random.normal(k_x, (batch, seq_len, d_model), jnp.float32)
    params = init_params(k_p, d_model, vocab_size)

    out = mlm_decoder(x, params)
    out = jax.block_until_ready(out)

    ref = reference_forward(x, params)
    assert out.shape == (batch, seq_len, vocab_size)
    assert jnp.allclose(out, ref, atol=2e-4, rtol=2e-4), "mismatch vs reference"

    print("KERNEL_OK")
</pallas_src>

<mosaic_0001>
module attributes {stable_mosaic.version = 11 : i64} {
  func.func @_mlm_decoder_kernel(%arg0: i32, %arg1: i32, %arg2: memref<16x128xf32, #tpu.memory_space<vmem>>, %arg3: memref<128x128xf32, #tpu.memory_space<vmem>>, %arg4: memref<3x128xf32, #tpu.memory_space<vmem>>, %arg5: memref<128x128xf32, #tpu.memory_space<vmem>>, %arg6: memref<1x128xf32, #tpu.memory_space<vmem>>, %arg7: memref<16x128xf32, #tpu.memory_space<vmem>>, %arg8: memref<16x128xf32, #tpu.memory_space<vmem>>) attributes {dimension_semantics = [#tpu.dimension_semantics<parallel>, #tpu.dimension_semantics<arbitrary>], iteration_bounds = array<i64: 1, 1>, scalar_prefetch = 0 : i64, scratch_operands = 1 : i64, tpu.core_type = #tpu.core_type<tc>, window_params = [{transform_indices = @transform_0, window_bounds = array<i64: 16, 128>}, {pipeline_mode = #tpu.pipeline_mode<synchronous>, transform_indices = @transform_1, window_bounds = array<i64: 128, 128>}, {pipeline_mode = #tpu.pipeline_mode<synchronous>, transform_indices = @transform_2, window_bounds = array<i64: 3, 128>}, {transform_indices = @transform_3, window_bounds = array<i64: 128, 128>}, {transform_indices = @transform_4, window_bounds = array<i64: 1, 128>}, {transform_indices = @transform_5, window_bounds = array<i64: 16, 128>}]} {
    %c0_i32 = arith.constant 0 : i32
    %0 = arith.cmpi eq, %arg1, %c0_i32 : i32
    %1 = arith.extui %0 : i1 to i32
    %c0_i32_0 = arith.constant 0 : i32
    %2 = arith.cmpi ne, %1, %c0_i32_0 : i32
    scf.if %2 {
      %c0_8 = arith.constant 0 : index
      %c0_9 = arith.constant 0 : index
      %10 = vector.load %arg2[%c0_8, %c0_9] : memref<16x128xf32, #tpu.memory_space<vmem>>, vector<16x128xf32>
      %c0_10 = arith.constant 0 : index
      %c0_11 = arith.constant 0 : index
      %11 = vector.load %arg3[%c0_10, %c0_11] : memref<128x128xf32, #tpu.memory_space<vmem>>, vector<128x128xf32>
      %cst_12 = arith.constant dense<0.000000e+00> : vector<16x128xf32>
      %12 = tpu.matmul %10, %11, %cst_12 {dimension_numbers = #tpu.dot_dimension_numbers<[1], [0], [0], [1], [0, 0, 1, 1], [], []>} : vector<16x128xf32>, vector<128x128xf32>, vector<16x128xf32> -> vector<16x128xf32>
      %c0_13 = arith.constant 0 : index
      %c0_14 = arith.constant 0 : index
      %13 = vector.load %arg4[%c0_13, %c0_14] : memref<3x128xf32, #tpu.memory_space<vmem>>, vector<3x128xf32>
      %14 = vector.extract_strided_slice %13 {offsets = [0, 0], sizes = [1, 128], strides = [1, 1]} : vector<3x128xf32> to vector<1x128xf32>
      %15 = vector.extract_strided_slice %13 {offsets = [1, 0], sizes = [1, 128], strides = [1, 1]} : vector<3x128xf32> to vector<1x128xf32>
      %16 = vector.extract_strided_slice %13 {offsets = [2, 0], sizes = [1, 128], strides = [1, 1]} : vector<3x128xf32> to vector<1x128xf32>
      %17 = vector.broadcast %14 : vector<1x128xf32> to vector<16x128xf32>
      %18 = arith.addf %12, %17 : vector<16x128xf32>
      %cst_15 = arith.constant 0.000000e+00 : f32
      %19 = vector.broadcast %cst_15 : f32 to vector<16x128xf32>
      %20 = arith.cmpf oge, %18, %19 : vector<16x128xf32>
      %cst_16 = arith.constant 0.00999999977 : f32
      %21 = vector.broadcast %cst_16 : f32 to vector<16x128xf32>
      %22 = arith.mulf %21, %18 : vector<16x128xf32>
      %23 = arith.select %20, %18, %22 : vector<16x128xi1>, vector<16x128xf32>
      %cst_17 = arith.constant dense<0.000000e+00> : vector<16xf32>
      %24 = vector.multi_reduction <add>, %23, %cst_17 [1] : vector<16x128xf32> to vector<16xf32>
      %25 = vector.shape_cast %24 : vector<16xf32> to vector<16x1xf32>
      %cst_18 = arith.constant 3.125000e-02 : f32
      %26 = vector.broadcast %cst_18 : f32 to vector<16x1xf32>
      %27 = arith.mulf %25, %26 : vector<16x1xf32>
      %28 = vector.broadcast %27 : vector<16x1xf32> to vector<16x128xf32>
      %29 = arith.subf %23, %28 : vector<16x128xf32>
      %30 = tpu.iota {dimensions = array<i32: 1>} : vector<16x128xi32>
      %c32_i32 = arith.constant 32 : i32
      %31 = vector.broadcast %c32_i32 : i32 to vector<16x128xi32>
      %32 = arith.cmpi slt, %30, %31 : vector<16x128xi32>
      %cst_19 = arith.constant 0.000000e+00 : f32
      %33 = vector.broadcast %cst_19 : f32 to vector<16x128xf32>
      %34 = arith.select %32, %29, %33 : vector<16x128xi1>, vector<16x128xf32>
      %35 = arith.mulf %34, %34 : vector<16x128xf32>
      %cst_20 = arith.constant dense<0.000000e+00> : vector<16xf32>
      %36 = vector.multi_reduction <add>, %35, %cst_20 [1] : vector<16x128xf32> to vector<16xf32>
      %37 = vector.shape_cast %36 : vector<16xf32> to vector<16x1xf32>
      %cst_21 = arith.constant 3.125000e-02 : f32
      %38 = vector.broadcast %cst_21 : f32 to vector<16x1xf32>
      %39 = arith.mulf %37, %38 : vector<16x1xf32>
      %cst_22 = arith.constant 9.99999996E-13 : f32
      %40 = vector.broadcast %cst_22 : f32 to vector<16x1xf32>
      %41 = arith.addf %39, %40 : vector<16x1xf32>
      %42 = math.rsqrt %41 : vector<16x1xf32>
      %43 = vector.broadcast %42 : vector<16x1xf32> to vector<16x128xf32>
      %44 = arith.mulf %34, %43 : vector<16x128xf32>
      %45 = vector.broadcast %15 : vector<1x128xf32> to vector<16x128xf32>
      %46 = arith.mulf %44, %45 : vector<16x128xf32>
      %47 = vector.broadcast %16 : vector<1x128xf32> to vector<16x128xf32>
      %48 = arith.addf %46, %47 : vector<16x128xf32>
      %c0_23 = arith.constant 0 : index
      %c0_24 = arith.constant 0 : index
      %49 = vector.load %arg8[%c0_23, %c0_24] : memref<16x128xf32, #tpu.memory_space<vmem>>, vector<16x128xf32>
      tpu.vector_store %arg8[%c0_23, %c0_24], %48 {strides = array<i32>} : memref<16x128xf32, #tpu.memory_space<vmem>>, vector<16x128xf32>,
    } else {
    }
    %c0 = arith.constant 0 : index
    %c0_1 = arith.constant 0 : index
    %3 = vector.load %arg8[%c0, %c0_1] : memref<16x128xf32, #tpu.memory_space<vmem>>, vector<16x128xf32>
    %c0_2 = arith.constant 0 : index
    %c0_3 = arith.constant 0 : index
    %4 = vector.load %arg5[%c0_2, %c0_3] : memref<128x128xf32, #tpu.memory_space<vmem>>, vector<128x128xf32>
    %cst = arith.constant dense<0.000000e+00> : vector<16x128xf32>
    %5 = tpu.matmul %3, %4, %cst {dimension_numbers = #tpu.dot_dimension_numbers<[1], [0], [0], [1], [0, 0, 1, 1], [], []>} : vector<16x128xf32>, vector<128x128xf32>, vector<16x128xf32> -> vector<16x128xf32>
    %c0_4 = arith.constant 0 : index
    %c0_5 = arith.constant 0 : index
    %6 = vector.load %arg6[%c0_4, %c0_5] : memref<1x128xf32, #tpu.memory_space<vmem>>, vector<1x128xf32>
    %7 = vector.broadcast %6 : vector<1x128xf32> to vector<16x128xf32>
    %8 = arith.addf %5, %7 : vector<16x128xf32>
    %c0_6 = arith.constant 0 : index
    %c0_7 = arith.constant 0 : index
    %9 = vector.load %arg7[%c0_6, %c0_7] : memref<16x128xf32, #tpu.memory_space<vmem>>, vector<16x128xf32>
    tpu.vector_store %arg7[%c0_6, %c0_7], %8 {strides = array<i32>} : memref<16x128xf32, #tpu.memory_space<vmem>>, vector<16x128xf32>,
    return
  }
  func.func @transform_0(%arg0: i32, %arg1: i32) -> (i32, i32) {
    %c0_i32 = arith.constant 0 : i32
    %c0_i32_0 = arith.constant 0 : i32
    return %arg0, %c0_i32 : i32, i32
  }
  func.func @transform_1(%arg0: i32, %arg1: i32) -> (i32, i32) {
    %c0_i32 = arith.constant 0 : i32
    %c0_i32_0 = arith.constant 0 : i32
    %c0_i32_1 = arith.constant 0 : i32
    return %c0_i32, %c0_i32_0 : i32, i32
  }
  func.func @transform_2(%arg0: i32, %arg1: i32) -> (i32, i32) {
    %c0_i32 = arith.constant 0 : i32
    %c0_i32_0 = arith.constant 0 : i32
    %c0_i32_1 = arith.constant 0 : i32
    return %c0_i32, %c0_i32_0 : i32, i32
  }
  func.func @transform_3(%arg0: i32, %arg1: i32) -> (i32, i32) {
    %c0_i32 = arith.constant 0 : i32
    %c0_i32_0 = arith.constant 0 : i32
    return %c0_i32, %arg1 : i32, i32
  }
  func.func @transform_4(%arg0: i32, %arg1: i32) -> (i32, i32) {
    %c0_i32 = arith.constant 0 : i32
    %c0_i32_0 = arith.constant 0 : i32
    return %c0_i32, %arg1 : i32, i32
  }
  func.func @transform_5(%arg0: i32, %arg1: i32) -> (i32, i32) {
    %c0_i32 = arith.constant 0 : i32
    return %arg0, %arg1 : i32, i32
  }
}

</mosaic_0001>

<bundles_post_ra>
// kernel: mlm_decoder.1
= control target key start
LH: loop header
LB: loop body
LE: loop exit
PB: predicated region body
PF: predicated region fallthrough
CT: control target
= control target key end

     0   :  { %v81_v30 = vlaneseq  ;;  %s373_s1 = inlined_call_operand.vmem [shape: f32[128,128], index: 1, kind: input, shape index: {}]   ;;  %s374_s0 = inlined_call_operand.vmem [shape: f32[16,128], index: 0, kind: input, shape index: {}]   ;;  %s375_s2 = inlined_call_operand.vmem [shape: f32[3,128], index: 2, kind: input, shape index: {}]   ;;  %s376_s3 = inlined_call_operand.vmem [shape: f32[128,128], index: 3, kind: input, shape index: {}]   ;;  %s377_s4 = inlined_call_operand.vmem [shape: f32[1,128], index: 4, kind: input, shape index: {}]   ;;  %s378_s5 = inlined_call_operand.vmem [shape: f32[16,128], index: 5, kind: output, shape index: {}]  }
   0x1   :  { %v41_v0 = vld [vmem:[%s373_s1 + $0x78] sm:$0xff]  ;;  %v40_v1 = vld [vmem:[%s373_s1 + $0x70] sm:$0xff]  ;;  %v39_v2 = vld [vmem:[%s373_s1 + $0x68] sm:$0xff] }
   0x2   :  { %177 = vmatpush.msra.mxu2 %v41_v0  ;;  %44 = vmatpush.msra.mxu0 %v41_v0  ;;  %v38_v3 = vld [vmem:[%s373_s1 + $0x60] sm:$0xff]  ;;  %v37_v4 = vld [vmem:[%s373_s1 + $0x58] sm:$0xff]  ;;  %v36_v5 = vld [vmem:[%s373_s1 + $0x50] sm:$0xff]  ;;  %v82_v31 = vand.u32 127, %v81_v30 }
   0x3   :  { %v35_v6 = vld [vmem:[%s373_s1 + $0x48] sm:$0xff]  ;;  %v34_v7 = vld [vmem:[%s373_s1 + $0x40] sm:$0xff]  ;;  %v33_v8 = vld [vmem:[%s373_s1 + $0x38] sm:$0xff] }
   0x4   :  { %178 = vmatpush.msra.mxu2 %v40_v1  ;;  %45 = vmatpush.msra.mxu0 %v40_v1  ;;  %v32_v9 = vld [vmem:[%s373_s1 + $0x30] sm:$0xff]  ;;  %v31_v10 = vld [vmem:[%s373_s1 + $0x28] sm:$0xff]  ;;  %v30_v11 = vld [vmem:[%s373_s1 + $0x20] sm:$0xff]  ;;  %vm83_vm2 = vcmp.lt.s32.totalorder %v82_v31, 32 }
   0x5   :  { %v29_v12 = vld [vmem:[%s373_s1 + $0x18] sm:$0xff]  ;;  %v28_v13 = vld [vmem:[%s373_s1 + $0x10] sm:$0xff]  ;;  %v27_v14 = vld [vmem:[%s373_s1 + $0x8] sm:$0xff] }
   0x6   :  { %179 = vmatpush.msra.mxu2 %v39_v2  ;;  %46 = vmatpush.msra.mxu0 %v39_v2  ;;  %v26_v15 = vld [vmem:[%s373_s1] sm:$0xff]  ;;  %v25_v16 = vld [vmem:[%s374_s0 + $0x8] sm:$0xff]  ;;  %v143_v28 = vld [vmem:[%s376_s3 + $0x78] sm:$0xff] }
   0x7   :  { %v24_v17 = vld [vmem:[%s374_s0] sm:$0xff]  ;;  %v142_v29 = vld [vmem:[%s376_s3 + $0x70] sm:$0xff]  ;;  %193 = vmatpush.msra.mxu3 %v143_v28  ;;  %148 = vmatpush.msra.mxu1 %v143_v28  ;;  %v141_v42 = vld [vmem:[%s376_s3 + $0x68] sm:$0xff] }
   0x8   :  { %180 = vmatpush.msra.mxu2 %v38_v3  ;;  %47 = vmatpush.msra.mxu0 %v38_v3  ;;  %v301_v18 = vld [vmem:[%s375_s2] sm:$0x7]  ;;  %v139_v44 = vld [vmem:[%s376_s3 + $0x58] sm:$0xff]  ;;  %v138_v45 = vld [vmem:[%s376_s3 + $0x50] sm:$0xff] }
   0x9   :  { %v43_v19 = vperm.slane %v301_v18, 0  ;;  %194 = vmatpush.msra.mxu3 %v142_v29  ;;  %149 = vmatpush.msra.mxu1 %v142_v29  ;;  %v140_v43 = vld [vmem:[%s376_s3 + $0x60] sm:$0xff]  ;;  %v137_v46 = vld [vmem:[%s376_s3 + $0x48] sm:$0xff]  ;;  %v135_v48 = vld [vmem:[%s376_s3 + $0x38] sm:$0xff] }
   0xa   :  { %181 = vmatpush.msra.mxu2 %v37_v4  ;;  %48 = vmatpush.msra.mxu0 %v37_v4  ;;  %v136_v47 = vld [vmem:[%s376_s3 + $0x40] sm:$0xff]  ;;  %v134_v49 = vld [vmem:[%s376_s3 + $0x30] sm:$0xff]  ;;  %v133_v50 = vld [vmem:[%s376_s3 + $0x28] sm:$0xff] }
   0xb   :  { %195 = vmatpush.msra.mxu3 %v141_v42  ;;  %150 = vmatpush.msra.mxu1 %v141_v42  ;;  %v132_v51 = vld [vmem:[%s376_s3 + $0x20] sm:$0xff]  ;;  %v131_v52 = vld [vmem:[%s376_s3 + $0x18] sm:$0xff]  ;;  %v130_v53 = vld [vmem:[%s376_s3 + $0x10] sm:$0xff] }
   0xc   :  { %182 = vmatpush.msra.mxu2 %v36_v5  ;;  %49 = vmatpush.msra.mxu0 %v36_v5  ;;  %v129_v54 = vld [vmem:[%s376_s3 + $0x8] sm:$0xff]  ;;  %v128_v55 = vld [vmem:[%s376_s3] sm:$0xff] }
   0xd   :  { %196 = vmatpush.msra.mxu3 %v140_v43  ;;  %151 = vmatpush.msra.mxu1 %v140_v43 }
   0xe   :  { %183 = vmatpush.msra.mxu2 %v35_v6  ;;  %50 = vmatpush.msra.mxu0 %v35_v6  ;;  %v118_v6 = vperm.slane %v301_v18, 1 }
   0xf   :  { %197 = vmatpush.msra.mxu3 %v139_v44  ;;  %152 = vmatpush.msra.mxu1 %v139_v44 }
  0x10   :  { %184 = vmatpush.msra.mxu2 %v34_v7  ;;  %51 = vmatpush.msra.mxu0 %v34_v7 }
  0x11   :  { %198 = vmatpush.msra.mxu3 %v138_v45  ;;  %153 = vmatpush.msra.mxu1 %v138_v45 }
  0x12   :  { %185 = vmatpush.msra.mxu2 %v33_v8  ;;  %52 = vmatpush.msra.mxu0 %v33_v8 }
  0x13   :  { %199 = vmatpush.msra.mxu3 %v137_v46  ;;  %154 = vmatpush.msra.mxu1 %v137_v46 }
  0x14   :  { %186 = vmatpush.msra.mxu2 %v32_v9  ;;  %53 = vmatpush.msra.mxu0 %v32_v9 }
  0x15   :  { %200 = vmatpush.msra.mxu3 %v136_v47  ;;  %155 = vmatpush.msra.mxu1 %v136_v47 }
  0x16   :  { %187 = vmatpush.msra.mxu2 %v31_v10  ;;  %54 = vmatpush.msra.mxu0 %v31_v10  ;;  %v121_v10 = vperm.slane %v301_v18, 2 }
  0x17   :  { %201 = vmatpush.msra.mxu3 %v135_v48  ;;  %156 = vmatpush.msra.mxu1 %v135_v48 }
  0x18   :  { %188 = vmatpush.msra.mxu2 %v30_v11  ;;  %55 = vmatpush.msra.mxu0 %v30_v11 }
  0x19   :  { %202 = vmatpush.msra.mxu3 %v134_v49  ;;  %157 = vmatpush.msra.mxu1 %v134_v49 }
  0x1a   :  { %189 = vmatpush.msra.mxu2 %v29_v12  ;;  %56 = vmatpush.msra.mxu0 %v29_v12 }
  0x1b   :  { %203 = vmatpush.msra.mxu3 %v133_v50  ;;  %158 = vmatpush.msra.mxu1 %v133_v50 }
  0x1c   :  { %190 = vmatpush.msra.mxu2 %v28_v13  ;;  %57 = vmatpush.msra.mxu0 %v28_v13 }
  0x1d   :  { %204 = vmatpush.msra.mxu3 %v132_v51  ;;  %159 = vmatpush.msra.mxu1 %v132_v51 }
  0x1e   :  { %191 = vmatpush.msra.mxu2 %v27_v14  ;;  %58 = vmatpush.msra.mxu0 %v27_v14 }
  0x1f   :  { %205 = vmatpush.msra.mxu3 %v131_v52  ;;  %160 = vmatpush.msra.mxu1 %v131_v52 }
  0x20   :  { %192 = vmatpush.msra.mxu2 %v26_v15  ;;  %59 = vmatpush.msra.mxu0 %v26_v15 }
  0x21   :  { %63 = vmatmul.f32.vlgmr.msra.gmra.mxu2 %v25_v16  ;;  %60 = vmatmul.f32.vlgmr.msra.gmra.mxu0 %v24_v17 }
  0x22   :  { %206 = vmatpush.msra.mxu3 %v130_v53  ;;  %161 = vmatpush.msra.mxu1 %v130_v53 }
  0x24   :  { %207 = vmatpush.msra.mxu3 %v129_v54  ;;  %162 = vmatpush.msra.mxu1 %v129_v54 }
  0x26   :  { %208 = vmatpush.msra.mxu3 %v128_v55  ;;  %163 = vmatpush.msra.mxu1 %v128_v55 }
  0x9e   :  { %v61_v22 = vpop.f32.mrf.mxu0 }
  0x9f   :  { %v62_v25 = vadd.f32 %v61_v22, %v43_v19 }
  0xa1   :  { %v69_v26 = vmul.f32 0.01, %v62_v25  ;;  %vm67_vm1 = vcmp.ge.f32.partialorder %v62_v25, 0.0 }
  0xa3   :  { %v71_v27 = vsel %vm67_vm1, %v62_v25, %v69_v26 }
  0xa4   :  { %v64_v20 = vpop.f32.mrf.mxu2 }
  0xa5   :  { %v65_v21 = vadd.f32 %v64_v20, %v43_v19 }
  0xa7   :  { %vm68_vm0 = vcmp.ge.f32.partialorder %v65_v21, 0.0  ;;  %v70_v23 = vmul.f32 0.01, %v65_v21 }
  0xa9   :  { %v72_v24 = vsel %vm68_vm0, %v65_v21, %v70_v23  ;;  %v209_v21 = vld [vmem:[%s377_s4] ss:$0 sm:$0xff] }
  0xaa   :  { %75 = vadd.xlane.f32.xlu0 %v72_v24 }
  0xb2   :  { %73 = vadd.xlane.f32.xlu0 %v71_v27 }
 0x11d   :  { %v76_v32 = vpop.xlane.xlu0 %75 }
 0x11e   :  { %v78_v33 = vmul.f32 0.03125, %v76_v32 }
 0x120   :  { %v80_v34 = vsub.f32 %v72_v24, %v78_v33 }
 0x122   :  { %v310_v35 = vsel %vm83_vm2, %v80_v34, 0.0 }
 0x123   :  { %v87_v36 = vmul.f32 %v310_v35, %v310_v35 }
 0x125   :  { %90 = vadd.xlane.f32.xlu1 %v87_v36  ;;  %v74_v37 = vpop.xlane.xlu0 %73 }
 0x126   :  { %v77_v38 = vmul.f32 0.03125, %v74_v37 }
 0x128   :  { %v79_v39 = vsub.f32 %v71_v27, %v77_v38 }
 0x12a   :  { %v314_v40 = vsel %vm83_vm2, %v79_v39, 0.0 }
 0x12b   :  { %v86_v41 = vmul.f32 %v314_v40, %v314_v40 }
 0x12d   :  { %88 = vadd.xlane.f32.xlu1 %v86_v41 }
 0x198   :  { %v91_v56 = vpop.xlane.xlu1 %90 }
 0x199   :  { %v93_v57 = vmul.f32 0.03125, %v91_v56 }
 0x19b   :  { %v95_v58 = vadd.f32 1e-12, %v93_v57 }
 0x19d   :  { %210 = vrsqrt.f32 %v95_v58  ;;  %vm112_vm4 = vweird.f32 %v95_v58 }
 0x1a0   :  { %v89_v59 = vpop.xlane.xlu1 %88 }
 0x1a1   :  { %v92_v60 = vmul.f32 0.03125, %v89_v59 }
 0x1a3   :  { %v211_v61 = vpop.eup %210  ;;  %v94_v62 = vadd.f32 1e-12, %v92_v60 }
 0x1a4   :  { %v107_v63 = vmul.f32 %v211_v61, %v95_v58  ;;  %vm113_vm3 = vweird.f32 %v211_v61 }
 0x1a5   :  { %212 = vrsqrt.f32 %v94_v62  ;;  %vm114_vm5 = vmor %vm112_vm4, %vm113_vm3  ;;  %vm102_vm7 = vweird.f32 %v94_v62 }
 0x1a6   :  { %v108_v0 = vmul.f32 %v211_v61, %v107_v63 }
 0x1a8   :  { %v109_v1 = vmul.f32 0.5, %v108_v0 }
 0x1aa   :  { %v110_v2 = vsub.f32 1.5, %v109_v1 }
 0x1ab   :  { %v213_v3 = vpop.eup %212 }
 0x1ac   :  { %v111_v4 = vmul.f32 %v211_v61, %v110_v2  ;;  %v97_v5 = vmul.f32 %v213_v3, %v94_v62  ;;  %vm103_vm6 = vweird.f32 %v213_v3 }
 0x1ad   :  { %vm104_vm8 = vmor %vm102_vm7, %vm103_vm6 }
 0x1ae   :  { %v98_v7 = vmul.f32 %v213_v3, %v97_v5  ;;  %v115_v8 = vsel %vm114_vm5, %v211_v61, %v111_v4 }
 0x1af   :  { %v117_v9 = vmul.f32 %v115_v8, %v310_v35 }
 0x1b0   :  { %v99_v11 = vmul.f32 0.5, %v98_v7 }
 0x1b1   :  { %v120_v12 = vmul.f32 %v118_v6, %v117_v9 }
 0x1b2   :  { %v100_v13 = vsub.f32 1.5, %v99_v11 }
 0x1b3   :  { %v123_v14 = vadd.f32 %v121_v10, %v120_v12 }
 0x1b4   :  { %v101_v15 = vmul.f32 %v213_v3, %v100_v13 }
 0x1b5   :  { %167 = vmatmul.f32.vlgmr.msra.gmra.mxu3 %v123_v14 }
 0x1b6   :  { %v105_v16 = vsel %vm104_vm8, %v213_v3, %v101_v15 }
 0x1b7   :  { %v116_v17 = vmul.f32 %v105_v16, %v314_v40 }
 0x1b9   :  { %v119_v19 = vmul.f32 %v118_v6, %v116_v17 }
 0x1bb   :  { %v122_v20 = vadd.f32 %v121_v10, %v119_v19 }
 0x1bd   :  { %164 = vmatmul.f32.vlgmr.msra.gmra.mxu1 %v122_v20 }
 0x238   :  { %v168_v18 = vpop.f32.mrf.mxu3 }
 0x239   :  { %v169_v22 = vadd.f32 %v209_v21, %v168_v18 }
 0x23a   :  { %v165_v23 = vpop.f32.mrf.mxu1 }
 0x23b   :  { %172 = vst [vmem:[%s378_s5 + $0x8] sm:$0xff] %v169_v22  ;;  %v166_v24 = vadd.f32 %v209_v21, %v165_v23 }
 0x23d   :  { %171 = vst [vmem:[%s378_s5] sm:$0xff] %v166_v24 }

</bundles_post_ra>
